<compile_context>
chip_gen: v7x
topology: tpu7x:2x2x1
jax: 0.10.0
libtpu: 0.0.40
codegen_flags: <defaults>
</compile_context>

<pallas_src>
import jax
import jax.numpy as jnp
from jax.experimental import pallas as pl
from jax.experimental.pallas import tpu as pltpu

hidden_size = 6
input_size = 4
num_classes = 1
num_layers = 1
seq_length = 4

LANE = 128                 # TPU lane width; one gate per 128-lane slab
BP = 8                     # f32 sublane count -> sequences per batch chunk
G = 4 * LANE               # packed gate width: [ i | f | o | g ] slabs
# Packed parameter row layout: [Wh_pad(128); Wx_pad(128); bias(1); fc(nc); pad]
WH_ROW = 0
WX_ROW = LANE
BIAS_ROW = 2 * LANE
FC_ROW = 2 * LANE + 1
P_ROWS = ((2 * LANE + 1 + num_classes + 7) // 8) * 8


def lstm_fc_kernel(x_ref, p_ref, out_ref):
    # x_ref  : (1, T*BP, 128)  time-major batch chunk; lanes [0, input_size)
    #          are meaningful, the rest zero.
    # p_ref  : (P_ROWS, 4*128) packed [Wh_pad; Wx_pad; bias; fc] (pack_params).
    # out_ref: (1, BP, num_classes)
    TB = x_ref.shape[1]
    T = TB // BP

    wh = p_ref[WH_ROW:WH_ROW + LANE, :]        # (128, 4*128), rows >= H zero
    wx = p_ref[WX_ROW:WX_ROW + LANE, :]        # (128, 4*128), rows >= I zero
    bias = p_ref[BIAS_ROW:BIAS_ROW + 1, :]     # (1, 4*128)  fused b_ih + b_hh

    # Constant masks turning one tanh into (sigmoid, sigmoid, sigmoid, tanh):
    # sigmoid(z) = 0.5*tanh(z/2) + 0.5, with the z/2 already folded into the
    # packed weights/bias of the i/f/o slabs. Hoisted out of the loop.
    lane = jax.lax.broadcasted_iota(jnp.int32, (BP, G), 1)
    is_sig = lane < 3 * LANE
    scale = jnp.where(is_sig, 0.5, 1.0)
    offset = jnp.where(is_sig, 0.5, 0.0)

    # Hoisted input projection for ALL timesteps: one MXU matmul (no recurrent
    # dependency); rows t*BP .. t*BP+BP-1 hold timestep t.
    x2d = x_ref[0]                                               # (T*BP, 128)
    xg = jnp.dot(x2d, wx, preferred_element_type=jnp.float32) + bias

    h = jnp.zeros((BP, LANE), jnp.float32)
    c = jnp.zeros((BP, LANE), jnp.float32)

    # T is tiny and static -> fully unrolled.
    # TODO(synk): for large T switch to lax.fori_loop(..., unroll=k) carrying
    # (h, c) and keep xg in a VMEM scratch indexed by t to bound vreg pressure.
    for t in range(T):
        pre = xg[t * BP:(t + 1) * BP, :] + jnp.dot(
            h, wh, preferred_element_type=jnp.float32)           # one MXU op
        act = jnp.tanh(pre) * scale + offset                     # 1st EUP launch
        i_g = act[:, 0 * LANE:1 * LANE]
        f_g = act[:, 1 * LANE:2 * LANE]
        o_g = act[:, 2 * LANE:3 * LANE]
        g_g = act[:, 3 * LANE:4 * LANE]
        c = f_g * c + i_g * g_g
        h = o_g * jnp.tanh(c)                                    # 2nd EUP launch

    # FC head: VPU multiply + lane reduce (one-time epilogue).
    cols = []
    for cidx in range(num_classes):
        w_fc = p_ref[FC_ROW + cidx:FC_ROW + cidx + 1, 0:LANE]          # (1,128)
        b_fc = p_ref[FC_ROW + cidx:FC_ROW + cidx + 1, LANE:LANE + 1]   # (1,1)
        cols.append(jnp.sum(h * w_fc, axis=-1, keepdims=True) + b_fc)
    res = cols[0] if num_classes == 1 else jnp.concatenate(cols, axis=-1)
    out_ref[...] = res.reshape(out_ref.shape)


def init_params(key):
    """Deterministic parameters with the same shapes as nn.LSTM / nn.Linear."""
    k = 1.0 / jnp.sqrt(hidden_size)
    keys = jax.random.split(key, 6)
    w_ih = jax.random.uniform(keys[0], (4 * hidden_size, input_size),
                              jnp.float32, -k, k)   # torch weight_ih_l0
    w_hh = jax.random.uniform(keys[1], (4 * hidden_size, hidden_size),
                              jnp.float32, -k, k)   # torch weight_hh_l0
    b_ih = jax.random.uniform(keys[2], (4 * hidden_size,), jnp.float32, -k, k)
    b_hh = jax.random.uniform(keys[3], (4 * hidden_size,), jnp.float32, -k, k)
    w_fc = jax.random.uniform(keys[4], (num_classes, hidden_size),
                              jnp.float32, -k, k)   # torch fc.weight
    b_fc = jax.random.uniform(keys[5], (num_classes,), jnp.float32, -k, k)
    return w_ih, w_hh, b_ih, b_hh, w_fc, b_fc


def pack_params(w_ih, w_hh, b_ih, b_hh, w_fc, b_fc):
    """Glue: fuse gates, reorder torch (i,f,g,o) -> slab order (i,f,o,g),
    pre-scale sigmoid slabs by 0.5 (single-tanh trick), zero-pad to the
    128-row / 128-lane-slab layout and append the FC head as extra rows."""
    H, I = hidden_size, input_size
    order = (0, 1, 3, 2)               # slab s holds torch gate order[s]
    gate_scale = (0.5, 0.5, 0.5, 1.0)  # i,f,o pre-scaled for sigmoid-via-tanh
    b = b_ih + b_hh

    packed = jnp.zeros((P_ROWS, G), jnp.float32)
    for s, (g, sc) in enumerate(zip(order, gate_scale)):
        col = s * LANE
        packed = packed.at[WH_ROW:WH_ROW + H, col:col + H].set(
            sc * w_hh[g * H:(g + 1) * H].T)
        packed = packed.at[WX_ROW:WX_ROW + I, col:col + H].set(
            sc * w_ih[g * H:(g + 1) * H].T)
        packed = packed.at[BIAS_ROW, col:col + H].set(sc * b[g * H:(g + 1) * H])
    packed = packed.at[FC_ROW:FC_ROW + num_classes, 0:H].set(w_fc)
    packed = packed.at[FC_ROW:FC_ROW + num_classes, LANE:LANE + 1].set(
        b_fc.reshape(num_classes, 1))
    return packed.astype(jnp.float32)


def lstm_forward(x, packed):
    B, T, I = x.shape
    BC = (B + BP - 1) // BP   # batch chunks of 8 sequences (full sublanes)
    # Glue: pad batch to BC*BP, pad features to 128 lanes, time-major per chunk.
    x_pad = jnp.pad(x.astype(jnp.float32),
                    ((0, BC * BP - B), (0, 0), (0, LANE - I)))
    x_tm = (x_pad.reshape(BC, BP, T, LANE)
            .transpose(0, 2, 1, 3)
            .reshape(BC, T * BP, LANE))
    out = pl.pallas_call(
        lstm_fc_kernel,
        out_shape=jax.ShapeDtypeStruct((BC, BP, num_classes), jnp.float32),
        grid=(BC,),
        in_specs=[
            pl.BlockSpec((1, T * BP, LANE), lambda c: (c, 0, 0)),
            pl.BlockSpec((P_ROWS, G), lambda c: (0, 0)),
        ],
        out_specs=pl.BlockSpec((1, BP, num_classes), lambda c: (c, 0, 0)),
        compiler_params=pltpu.CompilerParams(
            dimension_semantics=("parallel",)),   # v7x: chunks across both TCs
    )(x_tm, packed)
    return out.reshape(BC * BP, num_classes)[:B]


def lstm_reference(x, w_ih, w_hh, b_ih, b_hh, w_fc, b_fc):
    """Pure-JAX reference mirroring torch.nn.LSTM(batch_first=True) + Linear."""
    H = hidden_size
    B = x.shape[0]
    h = jnp.zeros((B, H), jnp.float32)
    c = jnp.zeros((B, H), jnp.float32)
    for t in range(x.shape[1]):
        gates = x[:, t, :] @ w_ih.T + h @ w_hh.T + b_ih + b_hh
        i = jax.nn.sigmoid(gates[:, 0:H])
        f = jax.nn.sigmoid(gates[:, H:2 * H])
        g = jnp.tanh(gates[:, 2 * H:3 * H])
        o = jax.nn.sigmoid(gates[:, 3 * H:4 * H])
        c = f * c + i * g
        h = o * jnp.tanh(c)
    return h @ w_fc.T + b_fc


if __name__ == "__main__":
    key = jax.random.PRNGKey(0)
    k_x, k_p = jax.random.split(key)

    batch = 2
    x = jax.random.normal(k_x, (batch, seq_length, input_size), jnp.float32)

    raw = init_params(k_p)
    packed = pack_params(*raw)

    out = lstm_forward(x, packed)
    out = jax.block_until_ready(out)

    ref = lstm_reference(x, *raw)
    assert out.shape == (batch, num_classes)
    assert jnp.allclose(out, ref, atol=1e-5, rtol=1e-5), (out, ref)

    print("KERNEL_OK")
</pallas_src>

<mosaic_0001>
module attributes {stable_mosaic.version = 11 : i64} {
  func.func @lstm_fc_kernel(%arg0: i32, %arg1: memref<1x32x128xf32, #tpu.memory_space<vmem>>, %arg2: memref<264x512xf32, #tpu.memory_space<vmem>>, %arg3: memref<1x8x1xf32, #tpu.memory_space<vmem>>) attributes {dimension_semantics = [#tpu.dimension_semantics<parallel>], iteration_bounds = array<i64: 1>, scalar_prefetch = 0 : i64, scratch_operands = 0 : i64, tpu.core_type = #tpu.core_type<tc>, window_params = [{transform_indices = @transform_0, window_bounds = array<i64: 1, 32, 128>}, {pipeline_mode = #tpu.pipeline_mode<synchronous>, transform_indices = @transform_1, window_bounds = array<i64: 264, 512>}, {transform_indices = @transform_2, window_bounds = array<i64: 1, 8, 1>}]} {
    %c0 = arith.constant 0 : index
    %c0_0 = arith.constant 0 : index
    %0 = vector.load %arg2[%c0, %c0_0] : memref<264x512xf32, #tpu.memory_space<vmem>>, vector<128x512xf32>
    %c128 = arith.constant 128 : index
    %c0_1 = arith.constant 0 : index
    %1 = vector.load %arg2[%c128, %c0_1] : memref<264x512xf32, #tpu.memory_space<vmem>>, vector<128x512xf32>
    %c256 = arith.constant 256 : index
    %c0_2 = arith.constant 0 : index
    %2 = vector.load %arg2[%c256, %c0_2] : memref<264x512xf32, #tpu.memory_space<vmem>>, vector<1x512xf32>
    %3 = tpu.iota {dimensions = array<i32: 1>} : vector<8x512xi32>
    %c384_i32 = arith.constant 384 : i32
    %4 = vector.broadcast %c384_i32 : i32 to vector<8x512xi32>
    %5 = arith.cmpi slt, %3, %4 : vector<8x512xi32>
    %cst = arith.constant 5.000000e-01 : f32
    %cst_3 = arith.constant 1.000000e+00 : f32
    %6 = vector.broadcast %cst : f32 to vector<8x512xf32>
    %7 = vector.broadcast %cst_3 : f32 to vector<8x512xf32>
    %8 = arith.select %5, %6, %7 : vector<8x512xi1>, vector<8x512xf32>
    %cst_4 = arith.constant 5.000000e-01 : f32
    %cst_5 = arith.constant 0.000000e+00 : f32
    %9 = vector.broadcast %cst_4 : f32 to vector<8x512xf32>
    %10 = vector.broadcast %cst_5 : f32 to vector<8x512xf32>
    %11 = arith.select %5, %9, %10 : vector<8x512xi1>, vector<8x512xf32>
    %c0_6 = arith.constant 0 : index
    %c0_7 = arith.constant 0 : index
    %c0_8 = arith.constant 0 : index
    %12 = vector.load %arg1[%c0_6, %c0_7, %c0_8] : memref<1x32x128xf32, #tpu.memory_space<vmem>>, vector<1x32x128xf32>
    %13 = vector.shape_cast %12 : vector<1x32x128xf32> to vector<32x128xf32>
    %cst_9 = arith.constant dense<0.000000e+00> : vector<32x512xf32>
    %14 = tpu.matmul %13, %1, %cst_9 {dimension_numbers = #tpu.dot_dimension_numbers<[1], [0], [0], [1], [0, 0, 1, 1], [], []>} : vector<32x128xf32>, vector<128x512xf32>, vector<32x512xf32> -> vector<32x512xf32>
    %15 = vector.broadcast %2 : vector<1x512xf32> to vector<32x512xf32>
    %16 = arith.addf %14, %15 : vector<32x512xf32>
    %cst_10 = arith.constant 0.000000e+00 : f32
    %17 = vector.broadcast %cst_10 : f32 to vector<8x128xf32>
    %cst_11 = arith.constant 0.000000e+00 : f32
    %18 = vector.broadcast %cst_11 : f32 to vector<8x128xf32>
    %19 = vector.extract_strided_slice %16 {offsets = [0, 0], sizes = [8, 512], strides = [1, 1]} : vector<32x512xf32> to vector<8x512xf32>
    %cst_12 = arith.constant dense<0.000000e+00> : vector<8x512xf32>
    %20 = tpu.matmul %17, %0, %cst_12 {dimension_numbers = #tpu.dot_dimension_numbers<[1], [0], [0], [1], [0, 0, 1, 1], [], []>} : vector<8x128xf32>, vector<128x512xf32>, vector<8x512xf32> -> vector<8x512xf32>
    %21 = arith.addf %19, %20 : vector<8x512xf32>
    %22 = math.tanh %21 : vector<8x512xf32>
    %23 = arith.mulf %22, %8 : vector<8x512xf32>
    %24 = arith.addf %23, %11 : vector<8x512xf32>
    %25 = vector.extract_strided_slice %24 {offsets = [0, 0], sizes = [8, 128], strides = [1, 1]} : vector<8x512xf32> to vector<8x128xf32>
    %26 = vector.extract_strided_slice %24 {offsets = [0, 128], sizes = [8, 128], strides = [1, 1]} : vector<8x512xf32> to vector<8x128xf32>
    %27 = vector.extract_strided_slice %24 {offsets = [0, 256], sizes = [8, 128], strides = [1, 1]} : vector<8x512xf32> to vector<8x128xf32>
    %28 = vector.extract_strided_slice %24 {offsets = [0, 384], sizes = [8, 128], strides = [1, 1]} : vector<8x512xf32> to vector<8x128xf32>
    %29 = arith.mulf %26, %18 : vector<8x128xf32>
    %30 = arith.mulf %25, %28 : vector<8x128xf32>
    %31 = arith.addf %29, %30 : vector<8x128xf32>
    %32 = math.tanh %31 : vector<8x128xf32>
    %33 = arith.mulf %27, %32 : vector<8x128xf32>
    %34 = vector.extract_strided_slice %16 {offsets = [8, 0], sizes = [8, 512], strides = [1, 1]} : vector<32x512xf32> to vector<8x512xf32>
    %cst_13 = arith.constant dense<0.000000e+00> : vector<8x512xf32>
    %35 = tpu.matmul %33, %0, %cst_13 {dimension_numbers = #tpu.dot_dimension_numbers<[1], [0], [0], [1], [0, 0, 1, 1], [], []>} : vector<8x128xf32>, vector<128x512xf32>, vector<8x512xf32> -> vector<8x512xf32>
    %36 = arith.addf %34, %35 : vector<8x512xf32>
    %37 = math.tanh %36 : vector<8x512xf32>
    %38 = arith.mulf %37, %8 : vector<8x512xf32>
    %39 = arith.addf %38, %11 : vector<8x512xf32>
    %40 = vector.extract_strided_slice %39 {offsets = [0, 0], sizes = [8, 128], strides = [1, 1]} : vector<8x512xf32> to vector<8x128xf32>
    %41 = vector.extract_strided_slice %39 {offsets = [0, 128], sizes = [8, 128], strides = [1, 1]} : vector<8x512xf32> to vector<8x128xf32>
    %42 = vector.extract_strided_slice %39 {offsets = [0, 256], sizes = [8, 128], strides = [1, 1]} : vector<8x512xf32> to vector<8x128xf32>
    %43 = vector.extract_strided_slice %39 {offsets = [0, 384], sizes = [8, 128], strides = [1, 1]} : vector<8x512xf32> to vector<8x128xf32>
    %44 = arith.mulf %41, %31 : vector<8x128xf32>
    %45 = arith.mulf %40, %43 : vector<8x128xf32>
    %46 = arith.addf %44, %45 : vector<8x128xf32>
    %47 = math.tanh %46 : vector<8x128xf32>
    %48 = arith.mulf %42, %47 : vector<8x128xf32>
    %49 = vector.extract_strided_slice %16 {offsets = [16, 0], sizes = [8, 512], strides = [1, 1]} : vector<32x512xf32> to vector<8x512xf32>
    %cst_14 = arith.constant dense<0.000000e+00> : vector<8x512xf32>
    %50 = tpu.matmul %48, %0, %cst_14 {dimension_numbers = #tpu.dot_dimension_numbers<[1], [0], [0], [1], [0, 0, 1, 1], [], []>} : vector<8x128xf32>, vector<128x512xf32>, vector<8x512xf32> -> vector<8x512xf32>
    %51 = arith.addf %49, %50 : vector<8x512xf32>
    %52 = math.tanh %51 : vector<8x512xf32>
    %53 = arith.mulf %52, %8 : vector<8x512xf32>
    %54 = arith.addf %53, %11 : vector<8x512xf32>
    %55 = vector.extract_strided_slice %54 {offsets = [0, 0], sizes = [8, 128], strides = [1, 1]} : vector<8x512xf32> to vector<8x128xf32>
    %56 = vector.extract_strided_slice %54 {offsets = [0, 128], sizes = [8, 128], strides = [1, 1]} : vector<8x512xf32> to vector<8x128xf32>
    %57 = vector.extract_strided_slice %54 {offsets = [0, 256], sizes = [8, 128], strides = [1, 1]} : vector<8x512xf32> to vector<8x128xf32>
    %58 = vector.extract_strided_slice %54 {offsets = [0, 384], sizes = [8, 128], strides = [1, 1]} : vector<8x512xf32> to vector<8x128xf32>
    %59 = arith.mulf %56, %46 : vector<8x128xf32>
    %60 = arith.mulf %55, %58 : vector<8x128xf32>
    %61 = arith.addf %59, %60 : vector<8x128xf32>
    %62 = math.tanh %61 : vector<8x128xf32>
    %63 = arith.mulf %57, %62 : vector<8x128xf32>
    %64 = vector.extract_strided_slice %16 {offsets = [24, 0], sizes = [8, 512], strides = [1, 1]} : vector<32x512xf32> to vector<8x512xf32>
    %cst_15 = arith.constant dense<0.000000e+00> : vector<8x512xf32>
    %65 = tpu.matmul %63, %0, %cst_15 {dimension_numbers = #tpu.dot_dimension_numbers<[1], [0], [0], [1], [0, 0, 1, 1], [], []>} : vector<8x128xf32>, vector<128x512xf32>, vector<8x512xf32> -> vector<8x512xf32>
    %66 = arith.addf %64, %65 : vector<8x512xf32>
    %67 = math.tanh %66 : vector<8x512xf32>
    %68 = arith.mulf %67, %8 : vector<8x512xf32>
    %69 = arith.addf %68, %11 : vector<8x512xf32>
    %70 = vector.extract_strided_slice %69 {offsets = [0, 0], sizes = [8, 128], strides = [1, 1]} : vector<8x512xf32> to vector<8x128xf32>
    %71 = vector.extract_strided_slice %69 {offsets = [0, 128], sizes = [8, 128], strides = [1, 1]} : vector<8x512xf32> to vector<8x128xf32>
    %72 = vector.extract_strided_slice %69 {offsets = [0, 256], sizes = [8, 128], strides = [1, 1]} : vector<8x512xf32> to vector<8x128xf32>
    %73 = vector.extract_strided_slice %69 {offsets = [0, 384], sizes = [8, 128], strides = [1, 1]} : vector<8x512xf32> to vector<8x128xf32>
    %74 = arith.mulf %71, %61 : vector<8x128xf32>
    %75 = arith.mulf %70, %73 : vector<8x128xf32>
    %76 = arith.addf %74, %75 : vector<8x128xf32>
    %77 = math.tanh %76 : vector<8x128xf32>
    %78 = arith.mulf %72, %77 : vector<8x128xf32>
    %c257 = arith.constant 257 : index
    %c0_16 = arith.constant 0 : index
    %79 = vector.load %arg2[%c257, %c0_16] : memref<264x512xf32, #tpu.memory_space<vmem>>, vector<1x128xf32>
    %c257_17 = arith.constant 257 : index
    %c128_18 = arith.constant 128 : index
    %80 = vector.load %arg2[%c257_17, %c128_18] : memref<264x512xf32, #tpu.memory_space<vmem>>, vector<1x1xf32>
    %81 = vector.broadcast %79 : vector<1x128xf32> to vector<8x128xf32>
    %82 = arith.mulf %78, %81 : vector<8x128xf32>
    %cst_19 = arith.constant dense<0.000000e+00> : vector<8xf32>
    %83 = vector.multi_reduction <add>, %82, %cst_19 [1] : vector<8x128xf32> to vector<8xf32>
    %84 = vector.shape_cast %83 : vector<8xf32> to vector<8x1xf32>
    %85 = vector.broadcast %80 : vector<1x1xf32> to vector<8x1xf32>
    %86 = arith.addf %84, %85 : vector<8x1xf32>
    %87 = vector.shape_cast %86 : vector<8x1xf32> to vector<1x8x1xf32>
    %c0_20 = arith.constant 0 : index
    %c0_21 = arith.constant 0 : index
    %c0_22 = arith.constant 0 : index
    %88 = vector.load %arg3[%c0_20, %c0_21, %c0_22] : memref<1x8x1xf32, #tpu.memory_space<vmem>>, vector<1x8x1xf32>
    tpu.vector_store %arg3[%c0_20, %c0_21, %c0_22], %87 {strides = array<i32>} : memref<1x8x1xf32, #tpu.memory_space<vmem>>, vector<1x8x1xf32>,
    return
  }
  func.func @transform_0(%arg0: i32) -> (i32, i32, i32) {
    %c0_i32 = arith.constant 0 : i32
    %c0_i32_0 = arith.constant 0 : i32
    %c0_i32_1 = arith.constant 0 : i32
    return %arg0, %c0_i32, %c0_i32_0 : i32, i32, i32
  }
  func.func @transform_1(%arg0: i32) -> (i32, i32) {
    %c0_i32 = arith.constant 0 : i32
    %c0_i32_0 = arith.constant 0 : i32
    %c0_i32_1 = arith.constant 0 : i32
    return %c0_i32, %c0_i32_0 : i32, i32
  }
  func.func @transform_2(%arg0: i32) -> (i32, i32, i32) {
    %c0_i32 = arith.constant 0 : i32
    %c0_i32_0 = arith.constant 0 : i32
    %c0_i32_1 = arith.constant 0 : i32
    return %arg0, %c0_i32, %c0_i32_0 : i32, i32, i32
  }
}

</mosaic_0001>

<bundles_post_ra>
// kernel: tpu_custom_call.1
= control target key start
LH: loop header
LB: loop body
LE: loop exit
PB: predicated region body
PF: predicated region fallthrough
CT: control target
= control target key end

     0   :  { %7 = vsyncpa [#allocation3], 0  ;;  %s1789_s0 = inlined_call_operand.hbm [shape: f32[1,32,128], index: 0, kind: input, shape index: {}]   ;;  %s1790_s1 = inlined_call_operand.hbm [shape: f32[264,512], index: 1, kind: input, shape index: {}]   ;;  %s1791_s2 = inlined_call_operand.vmem [shape: f32[1,8,1], index: 2, kind: output, shape index: {}]  }
   0x1   :  { %8 = vsyncpa [#allocation5], 0  ;;  %s1502_s9 = smov [#allocation2]   ;;  %s1454_s13 = scalar_lea.hbm %s1789_s0, 512 }
   0x2   :  { %s14_s10 = sshll.u32 %s1502_s9, 4  ;;  %p1455_p0 = scmp.ne.s32.totalorder %s1789_s0, %s1454_s13  ;;  %s15_s10 = int_to_ptr.vmem [resolvable:$true] %s14_s10 }
   0x3   :  { %p1458_p1 = scmp.lt.u32.totalorder %s1454_s13, %s1789_s0 }
   0x5   :  { %p1460_p2 = pnand %p1458_p1, %p1455_p0 }
   0x7   :  { %1463 = shalt.err (!%p1460_p2)
}
   0x8   :  { %s1464_s18 = scalar_lea.vmem %s15_s10, 512  ;;  %p1469_p4 = scmp.lt.s32.totalorder %s15_s10, %s15_s10 }
   0x9   :  { %p1465_p3 = scmp.ne.s32.totalorder %s15_s10, %s1464_s18  ;;  %p1470_p5 = scmp.lt.s32.totalorder %s1464_s18, %s1464_s18 }
   0xb   :  { %p1471_p6 = por %p1470_p5, %p1469_p4 }
   0xd   :  { %p1472_p7 = pnand %p1471_p6, %p1465_p3 }
   0xf   :  { %1475 = shalt.err (!%p1472_p7)
}
  0x10   :  { %s1503_s19 = smov 128   ;;  %s1504_s20 = smov 8  }
  0x11   :  { %20 = dma.hbm_to_vmem [thread:$0]  %s1789_s0, 512, %s15_s10, [#allocation3], %s1503_s19, %s1503_s19, %s1504_s20  }
  0x12   :  { %s1505_s23 = smov [#allocation4]   ;;  %s1476_s27 = scalar_lea.hbm %s1790_s1, 16896 }
  0x13   :  { %s26_s24 = sshll.u32 %s1505_s23, 4  ;;  %p1477_p8 = scmp.ne.s32.totalorder %s1790_s1, %s1476_s27  ;;  %s27_s24 = int_to_ptr.vmem [resolvable:$true] %s26_s24 }
  0x14   :  { %p1480_p9 = scmp.lt.u32.totalorder %s1476_s27, %s1790_s1 }
  0x16   :  { %p1482_p10 = pnand %p1480_p9, %p1477_p8 }
  0x18   :  { %1485 = shalt.err (!%p1482_p10)
}
  0x19   :  { %s1486_s4 = scalar_lea.vmem %s27_s24, 16896  ;;  %p1491_p12 = scmp.lt.s32.totalorder %s27_s24, %s27_s24 }
  0x1a   :  { %p1487_p11 = scmp.ne.s32.totalorder %s27_s24, %s1486_s4  ;;  %p1492_p13 = scmp.lt.s32.totalorder %s1486_s4, %s1486_s4 }
  0x1c   :  { %p1493_p0 = por %p1492_p13, %p1491_p12 }
  0x1e   :  { %p1494_p1 = pnand %p1493_p0, %p1487_p11 }
  0x20   :  { %1497 = shalt.err (!%p1494_p1)
}
  0x21   :  { %s1506_s0 = smov 512   ;;  %s1507_s5 = smov 32  }
  0x22   :  { %32 = dma.hbm_to_vmem [thread:$0]  %s1790_s1, 16896, %s27_s24, [#allocation5], %s1506_s0, %s1506_s0, %s1507_s5  }
  0x23   :  { %1498 = dma.done.wait [#allocation3], 512  }
  0x24   :  { %1499 = vsyncadd [#allocation3], 4294966784 }
  0x25   :  { %1500 = dma.done.wait [#allocation5], 16896  }
  0x26   :  { %1501 = vsyncadd [#allocation5], 4294950400  ;;  %v1508_v0 = vmov 0.0   ;;  %v104_v1 = vld [vmem:[#allocation4 + $0x208] sm:$0xff]  ;;  %v106_v3 = vld [vmem:[#allocation4 + $0x218] sm:$0xff]  ;;  %vm1047_vm0 = vcmask 7168  }
  0x27   :  { %275 = vmatprep.mubr.f32.mxu0 %v1508_v0  ;;  %364 = vmatprep.mubr.f32.mxu1 %v1508_v0  ;;  %v108_v2 = vld [vmem:[#allocation4 + $0x228] sm:$0xff]  ;;  %v110_v5 = vld [vmem:[#allocation4 + $0x238] sm:$0xff]  ;;  %v103_v6 = vld [vmem:[#allocation4 + $0x200] sm:$0xff] }
  0x28   :  { %v1055_v4 = vpack.c.bf16 %v108_v2, %v104_v1  ;;  %v107_v7 = vld [vmem:[#allocation4 + $0x220] sm:$0xff]  ;;  %v1087_v8 = vpack.c.bf16 %v110_v5, %v106_v3  ;;  %v105_v10 = vld [vmem:[#allocation4 + $0x210] sm:$0xff]  ;;  %v112_v12 = vld [vmem:[#allocation4 + $0x248] sm:$0xff] }
  0x29   :  { %v1057_v9 = vpack.c.bf16 %v107_v7, %v103_v6  ;;  %v109_v11 = vld [vmem:[#allocation4 + $0x230] sm:$0xff]  ;;  %v116_v14 = vld [vmem:[#allocation4 + $0x268] sm:$0xff]  ;;  %v114_v15 = vld [vmem:[#allocation4 + $0x258] sm:$0xff] }
  0x2a   :  { %1056 = vmatprep.subr.bf16.mxu0 %v1055_v4  ;;  %v1089_v13 = vpack.c.bf16 %v109_v11, %v105_v10  ;;  %v118_v16 = vld [vmem:[#allocation4 + $0x278] sm:$0xff]  ;;  %1088 = vmatprep.subr.bf16.mxu1 %v1087_v8  ;;  %v1059_v17 = vpack.c.bf16 %v116_v14, %v112_v12  ;;  %v111_v19 = vld [vmem:[#allocation4 + $0x240] sm:$0xff]  ;;  %v113_v21 = vld [vmem:[#allocation4 + $0x250] sm:$0xff] }
  0x2b   :  { %1058 = vmatpush1.bf16.msra.mxu0 %v1057_v9  ;;  %v1091_v18 = vpack.c.bf16 %v118_v16, %v114_v15  ;;  %v115_v20 = vld [vmem:[#allocation4 + $0x260] sm:$0xff]  ;;  %v117_v23 = vld [vmem:[#allocation4 + $0x270] sm:$0xff]  ;;  %v120_v24 = vld [vmem:[#allocation4 + $0x288] sm:$0xff] }
  0x2c   :  { %1090 = vmatpush1.bf16.msra.mxu1 %v1089_v13  ;;  %v1061_v22 = vpack.c.bf16 %v115_v20, %v111_v19  ;;  %v124_v25 = vld [vmem:[#allocation4 + $0x2a8] sm:$0xff]  ;;  %1060 = vmatprep.subr.bf16.mxu0 %v1059_v17  ;;  %v1093_v26 = vpack.c.bf16 %v117_v23, %v113_v21  ;;  %v122_v28 = vld [vmem:[#allocation4 + $0x298] sm:$0xff]  ;;  %v119_v30 = vld [vmem:[#allocation4 + $0x280] sm:$0xff] }
  0x2d   :  { %1092 = vmatprep.subr.bf16.mxu1 %v1091_v18  ;;  %v1063_v27 = vpack.c.bf16 %v124_v25, %v120_v24  ;;  %v126_v29 = vld [vmem:[#allocation4 + $0x2b8] sm:$0xff]  ;;  %v123_v32 = vld [vmem:[#allocation4 + $0x2a0] sm:$0xff]  ;;  %v121_v33 = vld [vmem:[#allocation4 + $0x290] sm:$0xff] }
  0x2e   :  { %v1095_v31 = vpack.c.bf16 %v126_v29, %v122_v28  ;;  %v125_v34 = vld [vmem:[#allocation4 + $0x2b0] sm:$0xff]  ;;  %v1065_v35 = vpack.c.bf16 %v123_v32, %v119_v30  ;;  %v128_v36 = vld [vmem:[#allocation4 + $0x2c8] sm:$0xff]  ;;  %v130_v38 = vld [vmem:[#allocation4 + $0x2d8] sm:$0xff] }
  0x2f   :  { %1062 = vmatpush1.bf16.msra.mxu0 %v1061_v22  ;;  %v132_v37 = vld [vmem:[#allocation4 + $0x2e8] sm:$0xff]  ;;  %v1097_v39 = vpack.c.bf16 %v125_v34, %v121_v33  ;;  %v134_v41 = vld [vmem:[#allocation4 + $0x2f8] sm:$0xff]  ;;  %v127_v42 = vld [vmem:[#allocation4 + $0x2c0] sm:$0xff] }
  0x30   :  { %1094 = vmatpush1.bf16.msra.mxu1 %v1093_v26  ;;  %1064 = vmatprep.subr.bf16.mxu0 %v1063_v27  ;;  %v1067_v40 = vpack.c.bf16 %v132_v37, %v128_v36  ;;  %v131_v43 = vld [vmem:[#allocation4 + $0x2e0] sm:$0xff]  ;;  %v1099_v44 = vpack.c.bf16 %v134_v41, %v130_v38  ;;  %v129_v45 = vld [vmem:[#allocation4 + $0x2d0] sm:$0xff]  ;;  %v136_v47 = vld [vmem:[#allocation4 + $0x308] sm:$0xff] }
  0x31   :  { %1096 = vmatprep.subr.bf16.mxu1 %v1095_v31  ;;  %v133_v46 = vld [vmem:[#allocation4 + $0x2f0] sm:$0xff]  ;;  %v140_v48 = vld [vmem:[#allocation4 + $0x328] sm:$0xff]  ;;  %v138_v49 = vld [vmem:[#allocation4 + $0x318] sm:$0xff]  ;;  %v1069_v51 = vpack.c.bf16 %v131_v43, %v127_v42 }
  0x32   :  { %v142_v50 = vld [vmem:[#allocation4 + $0x338] sm:$0xff]  ;;  %v1101_v52 = vpack.c.bf16 %v133_v46, %v129_v45  ;;  %v1071_v53 = vpack.c.bf16 %v140_v48, %v136_v47  ;;  %v135_v54 = vld [vmem:[#allocation4 + $0x300] sm:$0xff]  ;;  %v137_v56 = vld [vmem:[#allocation4 + $0x310] sm:$0xff] }
  0x33   :  { %1066 = vmatpush1.bf16.msra.mxu0 %v1065_v35  ;;  %v139_v55 = vld [vmem:[#allocation4 + $0x320] sm:$0xff]  ;;  %v1103_v57 = vpack.c.bf16 %v142_v50, %v138_v49  ;;  %v141_v58 = vld [vmem:[#allocation4 + $0x330] sm:$0xff]  ;;  %v144_v59 = vld [vmem:[#allocation4 + $0x348] sm:$0xff] }
  0x34   :  { %1098 = vmatpush1.bf16.msra.mxu1 %v1097_v39  ;;  %1068 = vmatprep.subr.bf16.mxu0 %v1067_v40  ;;  %v148_v60 = vld [vmem:[#allocation4 + $0x368] sm:$0xff]  ;;  %v146_v61 = vld [vmem:[#allocation4 + $0x358] sm:$0xff]  ;;  %v1073_v63 = vpack.c.bf16 %v139_v55, %v135_v54  ;;  %v1105_v1 = vpack.c.bf16 %v141_v58, %v137_v56  ;;  %v143_v3 = vld [vmem:[#allocation4 + $0x340] sm:$0xff] }
  0x35   :  { %1100 = vmatprep.subr.bf16.mxu1 %v1099_v44  ;;  %v150_v62 = vld [vmem:[#allocation4 + $0x378] sm:$0xff]  ;;  %v1075_v2 = vpack.c.bf16 %v148_v60, %v144_v59  ;;  %v147_v4 = vld [vmem:[#allocation4 + $0x360] sm:$0xff]  ;;  %v145_v5 = vld [vmem:[#allocation4 + $0x350] sm:$0xff] }
  0x36   :  { %v1107_v6 = vpack.c.bf16 %v150_v62, %v146_v61  ;;  %v149_v7 = vld [vmem:[#allocation4 + $0x370] sm:$0xff]  ;;  %v152_v8 = vld [vmem:[#allocation4 + $0x388] sm:$0xff]  ;;  %v154_v10 = vld [vmem:[#allocation4 + $0x398] sm:$0xff]  ;;  %v1077_v12 = vpack.c.bf16 %v147_v4, %v143_v3 }
  0x37   :  { %1070 = vmatpush1.bf16.msra.mxu0 %v1069_v51  ;;  %v156_v9 = vld [vmem:[#allocation4 + $0x3a8] sm:$0xff]  ;;  %v158_v11 = vld [vmem:[#allocation4 + $0x3b8] sm:$0xff]  ;;  %v1109_v13 = vpack.c.bf16 %v149_v7, %v145_v5  ;;  %v151_v15 = vld [vmem:[#allocation4 + $0x380] sm:$0xff] }
  0x38   :  { %1102 = vmatpush1.bf16.msra.mxu1 %v1101_v52  ;;  %1072 = vmatprep.subr.bf16.mxu0 %v1071_v53  ;;  %v1079_v14 = vpack.c.bf16 %v156_v9, %v152_v8  ;;  %v155_v16 = vld [vmem:[#allocation4 + $0x3a0] sm:$0xff]  ;;  %v153_v17 = vld [vmem:[#allocation4 + $0x390] sm:$0xff]  ;;  %v1111_v18 = vpack.c.bf16 %v158_v11, %v154_v10  ;;  %v160_v20 = vld [vmem:[#allocation4 + $0x3c8] sm:$0xff] }
  0x39   :  { %1104 = vmatprep.subr.bf16.mxu1 %v1103_v57  ;;  %v157_v19 = vld [vmem:[#allocation4 + $0x3b0] sm:$0xff]  ;;  %v164_v21 = vld [vmem:[#allocation4 + $0x3e8] sm:$0xff]  ;;  %v162_v22 = vld [vmem:[#allocation4 + $0x3d8] sm:$0xff]  ;;  %v1081_v24 = vpack.c.bf16 %v155_v16, %v151_v15 }
  0x3a   :  { %v166_v23 = vld [vmem:[#allocation4 + $0x3f8] sm:$0xff]  ;;  %v1113_v25 = vpack.c.bf16 %v157_v19, %v153_v17  ;;  %v1083_v26 = vpack.c.bf16 %v164_v21, %v160_v20  ;;  %v159_v27 = vld [vmem:[#allocation4 + $0x3c0] sm:$0xff]  ;;  %v161_v29 = vld [vmem:[#allocation4 + $0x3d0] sm:$0xff] }
  0x3b   :  { %1074 = vmatpush1.bf16.msra.mxu0 %v1073_v63  ;;  %v163_v28 = vld [vmem:[#allocation4 + $0x3e0] sm:$0xff]  ;;  %v1115_v30 = vpack.c.bf16 %v166_v23, %v162_v22  ;;  %v165_v31 = vld [vmem:[#allocation4 + $0x3f0] sm:$0xff]  ;;  %v40_v32 = vld [vmem:[#allocation4 + $0x8] sm:$0xff] }
  0x3c   :  { %1106 = vmatpush1.bf16.msra.mxu1 %v1105_v1  ;;  %1076 = vmatprep.subr.bf16.mxu0 %v1075_v2  ;;  %v44_v33 = vld [vmem:[#allocation4 + $0x28] sm:$0xff]  ;;  %v42_v34 = vld [vmem:[#allocation4 + $0x18] sm:$0xff]  ;;  %v1085_v36 = vpack.c.bf16 %v163_v28, %v159_v27  ;;  %v1117_v37 = vpack.c.bf16 %v165_v31, %v161_v29  ;;  %v39_v39 = vld [vmem:[#allocation4] sm:$0xff] }
  0x3d   :  { %1108 = vmatprep.subr.bf16.mxu1 %v1107_v6  ;;  %v46_v35 = vld [vmem:[#allocation4 + $0x38] sm:$0xff]  ;;  %v1550_v38 = vpack.c.bf16 %v44_v33, %v40_v32  ;;  %v43_v40 = vld [vmem:[#allocation4 + $0x20] sm:$0xff]  ;;  %v41_v41 = vld [vmem:[#allocation4 + $0x10] sm:$0xff] }
  0x3e   :  { %v1552_v42 = vpack.c.bf16 %v46_v35, %v42_v34  ;;  %v45_v43 = vld [vmem:[#allocation4 + $0x30] sm:$0xff]  ;;  %v48_v44 = vld [vmem:[#allocation4 + $0x48] sm:$0xff]  ;;  %v50_v46 = vld [vmem:[#allocation4 + $0x58] sm:$0xff]  ;;  %v1554_v49 = vpack.c.bf16 %v43_v40, %v39_v39 }
  0x3f   :  { %1078 = vmatpush1.bf16.msra.mxu0 %v1077_v12  ;;  %v52_v45 = vld [vmem:[#allocation4 + $0x68] sm:$0xff]  ;;  %v54_v47 = vld [vmem:[#allocation4 + $0x78] sm:$0xff]  ;;  %v186_v48 = vld [vmem:[#allocation2] sm:$0xff]  ;;  %v1557_v50 = vpack.c.bf16 %v45_v43, %v41_v41 }
  0x40   :  { %1110 = vmatpush1.bf16.msra.mxu1 %v1109_v13  ;;  %1080 = vmatprep.subr.bf16.mxu0 %v1079_v14  ;;  %v1559_v51 = vpack.c.bf16 %v52_v45, %v48_v44  ;;  %v47_v52 = vld [vmem:[#allocation4 + $0x40] sm:$0xff]  ;;  %v49_v54 = vld [vmem:[#allocation4 + $0x50] sm:$0xff]  ;;  %v1562_v55 = vpack.c.bf16 %v54_v47, %v50_v46  ;;  %v56_v57 = vld [vmem:[#allocation4 + $0x88] sm:$0xff] }
  0x41   :  { %1112 = vmatprep.subr.bf16.mxu1 %v1111_v18  ;;  %v51_v53 = vld [vmem:[#allocation4 + $0x60] sm:$0xff]  ;;  %v53_v56 = vld [vmem:[#allocation4 + $0x70] sm:$0xff]  ;;  %v60_v58 = vld [vmem:[#allocation4 + $0xa8] sm:$0xff] }
  0x42   :  { %v58_v59 = vld [vmem:[#allocation4 + $0x98] sm:$0xff]  ;;  %v1565_v61 = vpack.c.bf16 %v51_v53, %v47_v52  ;;  %v187_v62 = vld [vmem:[#allocation2 + $0x8] sm:$0xff]  ;;  %v1569_v63 = vpack.c.bf16 %v53_v56, %v49_v54  ;;  %v1571_v1 = vpack.c.bf16 %v60_v58, %v56_v57  ;;  %v55_v2 = vld [vmem:[#allocation4 + $0x80] sm:$0xff] }
  0x43   :  { %1082 = vmatpush1.bf16.msra.mxu0 %v1081_v24  ;;  %v62_v60 = vld [vmem:[#allocation4 + $0xb8] sm:$0xff]  ;;  %v59_v3 = vld [vmem:[#allocation4 + $0xa0] sm:$0xff]  ;;  %v57_v4 = vld [vmem:[#allocation4 + $0x90] sm:$0xff] }
  0x44   :  { %1114 = vmatpush1.bf16.msra.mxu1 %v1113_v25  ;;  %1084 = vmatprep.subr.bf16.mxu0 %v1083_v26  ;;  %v1574_v5 = vpack.c.bf16 %v62_v60, %v58_v59  ;;  %v61_v6 = vld [vmem:[#allocation4 + $0xb0] sm:$0xff]  ;;  %v64_v7 = vld [vmem:[#allocation4 + $0xc8] sm:$0xff]  ;;  %v66_v9 = vld [vmem:[#allocation4 + $0xd8] sm:$0xff]  ;;  %v1579_v11 = vpack.c.bf16 %v59_v3, %v55_v2 }
  0x45   :  { %1116 = vmatprep.subr.bf16.mxu1 %v1115_v30  ;;  %v68_v8 = vld [vmem:[#allocation4 + $0xe8] sm:$0xff]  ;;  %v70_v10 = vld [vmem:[#allocation4 + $0xf8] sm:$0xff]  ;;  %v188_v12 = vld [vmem:[#allocation2 + $0x10] sm:$0xff]  ;;  %v1583_v13 = vpack.c.bf16 %v61_v6, %v57_v4 }
  0x46   :  { %v1585_v14 = vpack.c.bf16 %v68_v8, %v64_v7  ;;  %v63_v15 = vld [vmem:[#allocation4 + $0xc0] sm:$0xff]  ;;  %v65_v17 = vld [vmem:[#allocation4 + $0xd0] sm:$0xff]  ;;  %v1588_v18 = vpack.c.bf16 %v70_v10, %v66_v9  ;;  %v72_v20 = vld [vmem:[#allocation4 + $0x108] sm:$0xff] }
  0x47   :  { %1086 = vmatpush1.bf16.msra.mxu0 %v1085_v36  ;;  %v67_v16 = vld [vmem:[#allocation4 + $0xe0] sm:$0xff]  ;;  %v69_v19 = vld [vmem:[#allocation4 + $0xf0] sm:$0xff]  ;;  %v76_v21 = vld [vmem:[#allocation4 + $0x128] sm:$0xff] }
  0x48   :  { %1118 = vmatpush1.bf16.msra.mxu1 %v1117_v37  ;;  %1120 = vmatprep.subr.bf16.mxu0 %v1550_v38  ;;  %v74_v22 = vld [vmem:[#allocation4 + $0x118] sm:$0xff]  ;;  %v1593_v24 = vpack.c.bf16 %v67_v16, %v63_v15  ;;  %v1597_v26 = vpack.c.bf16 %v69_v19, %v65_v17  ;;  %v1599_v27 = vpack.c.bf16 %v76_v21, %v72_v20  ;;  %v71_v28 = vld [vmem:[#allocation4 + $0x100] sm:$0xff]  ;;  %v73_v30 = vld [vmem:[#allocation4 + $0x110] sm:$0xff] }
  0x49   :  { %1152 = vmatprep.subr.bf16.mxu1 %v1552_v42  ;;  %v78_v23 = vld [vmem:[#allocation4 + $0x138] sm:$0xff]  ;;  %v75_v29 = vld [vmem:[#allocation4 + $0x120] sm:$0xff]  ;;  %v77_v32 = vld [vmem:[#allocation4 + $0x130] sm:$0xff] }
  0x4a   :  { %276 = vmatmul.mubr.f32.vlgmr.msra.gmra.mrb[0].mxu0 %v186_v48  ;;  %v189_v25 = vld [vmem:[#allocation2 + $0x18] sm:$0xff]  ;;  %v1602_v31 = vpack.c.bf16 %v78_v23, %v74_v22  ;;  %v80_v33 = vld [vmem:[#allocation4 + $0x148] sm:$0xff]  ;;  %v1607_v37 = vpack.c.bf16 %v75_v29, %v71_v28  ;;  %v1611_v39 = vpack.c.bf16 %v77_v32, %v73_v30  ;;  %v79_v41 = vld [vmem:[#allocation4 + $0x140] sm:$0xff]  ;;  %v191_v22 = vlaneseq }
  0x4b   :  { %365 = vmatmul.mubr.f32.vlgmr.msra.gmra.mrb[0].mxu1 %v186_v48  ;;  %1122 = vmatpush1.bf16.msra.mxu0 %v1554_v49  ;;  %v84_v34 = vld [vmem:[#allocation4 + $0x168] sm:$0xff]  ;;  %v82_v35 = vld [vmem:[#allocation4 + $0x158] sm:$0xff]  ;;  %v83_v43 = vld [vmem:[#allocation4 + $0x160] sm:$0xff] }
  0x4c   :  { %1154 = vmatpush1.bf16.msra.mxu1 %v1557_v50  ;;  %1124 = vmatprep.subr.bf16.mxu0 %v1559_v51  ;;  %v86_v36 = vld [vmem:[#allocation4 + $0x178] sm:$0xff]  ;;  %v1613_v40 = vpack.c.bf16 %v84_v34, %v80_v33  ;;  %v81_v44 = vld [vmem:[#allocation4 + $0x150] sm:$0xff]  ;;  %v88_v47 = vld [vmem:[#allocation4 + $0x188] sm:$0xff]  ;;  %v1621_v54 = vpack.c.bf16 %v83_v43, %v79_v41  ;;  %v192_v23 = vshrl.u32 %v191_v22, 7 }
  0x4d   :  { %1156 = vmatprep.subr.bf16.mxu1 %v1562_v55  ;;  %281 = vmatprep.mubr.f32.mxu0 %v1508_v0  ;;  %v1616_v45 = vpack.c.bf16 %v86_v36, %v82_v35  ;;  %v85_v46 = vld [vmem:[#allocation4 + $0x170] sm:$0xff]  ;;  %v92_v48 = vld [vmem:[#allocation4 + $0x1a8] sm:$0xff]  ;;  %v90_v52 = vld [vmem:[#allocation4 + $0x198] sm:$0xff] }
  0x4e   :  { %370 = vmatprep.mubr.f32.mxu1 %v1508_v0  ;;  %282 = vmatmul.mubr.f32.gmra.mrb[2].mxu0 %v187_v62  ;;  %v94_v53 = vld [vmem:[#allocation4 + $0x1b8] sm:$0xff]  ;;  %v1625_v56 = vpack.c.bf16 %v85_v46, %v81_v44  ;;  %v1627_v57 = vpack.c.bf16 %v92_v48, %v88_v47  ;;  %v87_v58 = vld [vmem:[#allocation4 + $0x180] sm:$0xff]  ;;  %v89_v60 = vld [vmem:[#allocation4 + $0x190] sm:$0xff]  ;;  %v197_v29 = vsub.s32 1, %v192_v23  ;;  %v205_v30 = vsub.s32 3, %v192_v23 }
  0x4f   :  { %1126 = vmatpush1.bf16.msra.mxu0 %v1565_v61  ;;  %371 = vmatmul.mubr.f32.gmra.mrb[2].mxu1 %v187_v62  ;;  %v91_v59 = vld [vmem:[#allocation4 + $0x1a0] sm:$0xff]  ;;  %v1630_v62 = vpack.c.bf16 %v94_v53, %v90_v52  ;;  %v93_v2 = vld [vmem:[#allocation4 + $0x1b0] sm:$0xff]  ;;  %v96_v3 = vld [vmem:[#allocation4 + $0x1c8] sm:$0xff]  ;;  %v201_v48 = vsub.s32 2, %v192_v23 }
  0x50   :  { %1158 = vmatpush1.bf16.msra.mxu1 %v1569_v63  ;;  %1128 = vmatprep.subr.bf16.mxu0 %v1571_v1  ;;  %v100_v4 = vld [vmem:[#allocation4 + $0x1e8] sm:$0xff]  ;;  %v98_v6 = vld [vmem:[#allocation4 + $0x1d8] sm:$0xff]  ;;  %v1633_v8 = vpack.c.bf16 %v91_v59, %v87_v58  ;;  %v1637_v9 = vpack.c.bf16 %v93_v2, %v89_v60  ;;  %v99_v15 = vld [vmem:[#allocation4 + $0x1e0] sm:$0xff] }
  0x51   :  { %1160 = vmatprep.subr.bf16.mxu1 %v1574_v5  ;;  %287 = vmatprep.mubr.f32.mxu0 %v1508_v0  ;;  %v102_v7 = vld [vmem:[#allocation4 + $0x1f8] sm:$0xff]  ;;  %v1639_v10 = vpack.c.bf16 %v100_v4, %v96_v3  ;;  %v97_v17 = vld [vmem:[#allocation4 + $0x1d0] sm:$0xff] }
  0x52   :  { %376 = vmatprep.mubr.f32.mxu1 %v1508_v0  ;;  %288 = vmatmul.mubr.f32.gmra.mrb[4].mxu0 %v188_v12  ;;  %v1642_v16 = vpack.c.bf16 %v102_v7, %v98_v6  ;;  %v101_v19 = vld [vmem:[#allocation4 + $0x1f0] sm:$0xff] }
  0x53   :  { %1130 = vmatpush1.bf16.msra.mxu0 %v1579_v11  ;;  %377 = vmatmul.mubr.f32.gmra.mrb[4].mxu1 %v188_v12  ;;  %v95_v12 = vld [vmem:[#allocation4 + $0x1c0] sm:$0xff]  ;;  %v1649_v21 = vpack.c.bf16 %v101_v19, %v97_v17 }
  0x54   :  { %1162 = vmatpush1.bf16.msra.mxu1 %v1583_v13  ;;  %1132 = vmatprep.subr.bf16.mxu0 %v1585_v14  ;;  %v1645_v20 = vpack.c.bf16 %v99_v15, %v95_v12  ;;  %v168_v28 = vld [vmem:[#allocation4 + $0x400] ss:$8 sm:$0xf] }
  0x55   :  { %1164 = vmatprep.subr.bf16.mxu1 %v1588_v18  ;;  %293 = vmatprep.mubr.f32.mxu0 %v1508_v0  ;;  %v1694_v33 = vrot.slane %v168_v28, %v197_v29  ;;  %v1696_v34 = vrot.slane %v168_v28, %v205_v30  ;;  %v1701_v52 = vrot.slane %v168_v28, %v201_v48 }
  0x56   :  { %382 = vmatprep.mubr.f32.mxu1 %v1508_v0  ;;  %294 = vmatmul.mubr.f32.gmra.mrb[6].mxu0 %v189_v25 }
  0x57   :  { %1134 = vmatpush1.bf16.msra.mxu0 %v1593_v24  ;;  %383 = vmatmul.mubr.f32.gmra.mrb[6].mxu1 %v189_v25  ;;  %v193_v25 = vsub.s32 0, %v192_v23 }
  0x58   :  { %1166 = vmatpush1.bf16.msra.mxu1 %v1597_v26  ;;  %1136 = vmatprep.subr.bf16.mxu0 %v1599_v27 }
  0x59   :  { %1168 = vmatprep.subr.bf16.mxu1 %v1602_v31  ;;  %453 = vmatprep.mubr.f32.mxu0 %v1508_v0  ;;  %v1692_v32 = vrot.slane %v168_v28, %v193_v25 }
  0x5a   :  { %524 = vmatprep.mubr.f32.mxu1 %v1508_v0 }
  0x5b   :  { %1138 = vmatpush1.bf16.msra.mxu0 %v1607_v37 }
  0x5c   :  { %1170 = vmatpush1.bf16.msra.mxu1 %v1611_v39  ;;  %1140 = vmatprep.subr.bf16.mxu0 %v1613_v40 }
  0x5d   :  { %1172 = vmatprep.subr.bf16.mxu1 %v1616_v45 }
  0x5f   :  { %1142 = vmatpush1.bf16.msra.mxu0 %v1621_v54 }
  0x60   :  { %1174 = vmatpush1.bf16.msra.mxu1 %v1625_v56  ;;  %1144 = vmatprep.subr.bf16.mxu0 %v1627_v57 }
  0x61   :  { %1176 = vmatprep.subr.bf16.mxu1 %v1630_v62 }
  0x63   :  { %1146 = vmatpush1.bf16.msra.mxu0 %v1633_v8 }
  0x64   :  { %1178 = vmatpush1.bf16.msra.mxu1 %v1637_v9  ;;  %1148 = vmatprep.subr.bf16.mxu0 %v1639_v10 }
  0x65   :  { %1180 = vmatprep.subr.bf16.mxu1 %v1642_v16 }
  0x67   :  { %1150 = vmatpush1.bf16.msra.mxu0 %v1645_v20 }
  0x68   :  { %1182 = vmatpush1.bf16.msra.mxu1 %v1649_v21  ;;  %1184 = vmatprep.subr.bf16.mxu0 %v1550_v38 }
  0x69   :  { %1216 = vmatprep.subr.bf16.mxu1 %v1552_v42 }
  0x6a   :  { %454 = vmatmul.mubr.f32.vlgmr.msra.gmra.mrb[0].mxu0 %v1508_v0 }
  0x6b   :  { %525 = vmatmul.mubr.f32.vlgmr.msra.gmra.mrb[0].mxu1 %v1508_v0  ;;  %1186 = vmatpush1.bf16.msra.mxu0 %v1554_v49 }
  0x6c   :  { %1218 = vmatpush1.bf16.msra.mxu1 %v1557_v50  ;;  %1188 = vmatprep.subr.bf16.mxu0 %v1559_v51 }
  0x6d   :  { %1220 = vmatprep.subr.bf16.mxu1 %v1562_v55  ;;  %616 = vmatprep.mubr.f32.mxu0 %v1508_v0 }
  0x6e   :  { %687 = vmatprep.mubr.f32.mxu1 %v1508_v0 }
  0x6f   :  { %1190 = vmatpush1.bf16.msra.mxu0 %v1565_v61 }
  0x70   :  { %1222 = vmatpush1.bf16.msra.mxu1 %v1569_v63  ;;  %1192 = vmatprep.subr.bf16.mxu0 %v1571_v1 }
  0x71   :  { %1224 = vmatprep.subr.bf16.mxu1 %v1574_v5 }
  0x73   :  { %1194 = vmatpush1.bf16.msra.mxu0 %v1579_v11 }
  0x74   :  { %1226 = vmatpush1.bf16.msra.mxu1 %v1583_v13  ;;  %1196 = vmatprep.subr.bf16.mxu0 %v1585_v14 }
  0x75   :  { %1228 = vmatprep.subr.bf16.mxu1 %v1588_v18 }
  0x77   :  { %1198 = vmatpush1.bf16.msra.mxu0 %v1593_v24 }
  0x78   :  { %1230 = vmatpush1.bf16.msra.mxu1 %v1597_v26  ;;  %1200 = vmatprep.subr.bf16.mxu0 %v1599_v27 }
  0x79   :  { %1232 = vmatprep.subr.bf16.mxu1 %v1602_v31 }
  0x7b   :  { %1202 = vmatpush1.bf16.msra.mxu0 %v1607_v37 }
  0x7c   :  { %1234 = vmatpush1.bf16.msra.mxu1 %v1611_v39  ;;  %1204 = vmatprep.subr.bf16.mxu0 %v1613_v40 }
  0x7d   :  { %1236 = vmatprep.subr.bf16.mxu1 %v1616_v45 }
  0x7f   :  { %1206 = vmatpush1.bf16.msra.mxu0 %v1621_v54 }
  0x80   :  { %1238 = vmatpush1.bf16.msra.mxu1 %v1625_v56  ;;  %1208 = vmatprep.subr.bf16.mxu0 %v1627_v57 }
  0x81   :  { %1240 = vmatprep.subr.bf16.mxu1 %v1630_v62 }
  0x83   :  { %1210 = vmatpush1.bf16.msra.mxu0 %v1633_v8 }
  0x84   :  { %1242 = vmatpush1.bf16.msra.mxu1 %v1637_v9  ;;  %1212 = vmatprep.subr.bf16.mxu0 %v1639_v10 }
  0x85   :  { %1244 = vmatprep.subr.bf16.mxu1 %v1642_v16 }
  0x87   :  { %1214 = vmatpush1.bf16.msra.mxu0 %v1645_v20 }
  0x88   :  { %1246 = vmatpush1.bf16.msra.mxu1 %v1649_v21  ;;  %1248 = vmatprep.subr.bf16.mxu0 %v1550_v38 }
  0x89   :  { %1280 = vmatprep.subr.bf16.mxu1 %v1552_v42 }
 0x13d   :  { %v455_v35 = vpop.f32.mrb[0].mxu0 }
 0x13e   :  { %v1375_v36 = vadd.f32 %v455_v35, %v1692_v32  ;;  %v526_v41 = vpop.f32.mrb[0].mxu1  ;;  %v457_v43 = vpop.f32.mrb[1].mxu0 }
 0x13f   :  { %v1376_v44 = vadd.f32 %v457_v43, %v1694_v33  ;;  %v528_v46 = vpop.f32.mrb[1].mxu1  ;;  %v1383_v53 = vadd.f32 %v526_v41, %v1701_v52 }
 0x140   :  { %1414 = vtanh.f32 %v1375_v36  ;;  %v1384_v47 = vadd.f32 %v528_v46, %v1696_v34 }
 0x141   :  { %1416 = vtanh.f32 %v1376_v44 }
 0x142   :  { %1418 = vtanh.f32 %v1384_v47 }
 0x143   :  { %1420 = vtanh.f32 %v1383_v53 }
 0x14a   :  { %v1415_v58 = vpop.eup %1414 }
 0x14b   :  { %v539_v59 = vmul.f32 0.5, %v1415_v58  ;;  %v1417_v60 = vpop.eup %1416 }
 0x14c   :  { %v540_v3 = vmul.f32 0.5, %v1417_v60  ;;  %v1419_v4 = vpop.eup %1418 }
 0x14d   :  { %v543_v2 = vadd.f32 0.5, %v539_v59  ;;  %v1421_v17 = vpop.eup %1420 }
 0x14e   :  { %v544_v6 = vadd.f32 0.5, %v540_v3  ;;  %v541_v19 = vmul.f32 0.5, %v1421_v17 }
 0x14f   :  { %v548_v7 = vmul.f32 %v1419_v4, %v543_v2 }
 0x150   :  { %v547_v12 = vmul.f32 0.0, %v544_v6  ;;  %v545_v22 = vadd.f32 0.5, %v541_v19 }
 0x152   :  { %v1704_v15 = vadd.f32 %v548_v7, %v547_v12 }
 0x154   :  { %1422 = vtanh.f32 %v1704_v15 }
 0x15e   :  { %v1423_v23 = vpop.eup %1422 }
 0x15f   :  { %v551_v25 = vmul.f32 %v1423_v23, %v545_v22 }
 0x161   :  { %617 = vmatmul.mubr.f32.vlgmr.msra.gmra.mrb[2].mxu0 %v551_v25  ;;  %688 = vmatmul.mubr.f32.vlgmr.msra.gmra.mrb[2].mxu1 %v551_v25 }
 0x162   :  { %1250 = vmatpush1.bf16.msra.mxu0 %v1554_v49  ;;  %1282 = vmatpush1.bf16.msra.mxu1 %v1557_v50 }
 0x163   :  { %1252 = vmatprep.subr.bf16.mxu0 %v1559_v51  ;;  %1284 = vmatprep.subr.bf16.mxu1 %v1562_v55 }
 0x164   :  { %779 = vmatprep.mubr.f32.mxu0 %v1508_v0  ;;  %850 = vmatprep.mubr.f32.mxu1 %v1508_v0 }
 0x166   :  { %1254 = vmatpush1.bf16.msra.mxu0 %v1565_v61  ;;  %1286 = vmatpush1.bf16.msra.mxu1 %v1569_v63 }
 0x167   :  { %1256 = vmatprep.subr.bf16.mxu0 %v1571_v1  ;;  %1288 = vmatprep.subr.bf16.mxu1 %v1574_v5 }
 0x16a   :  { %1258 = vmatpush1.bf16.msra.mxu0 %v1579_v11  ;;  %1290 = vmatpush1.bf16.msra.mxu1 %v1583_v13 }
 0x16b   :  { %1260 = vmatprep.subr.bf16.mxu0 %v1585_v14  ;;  %1292 = vmatprep.subr.bf16.mxu1 %v1588_v18 }
 0x16e   :  { %1262 = vmatpush1.bf16.msra.mxu0 %v1593_v24  ;;  %1294 = vmatpush1.bf16.msra.mxu1 %v1597_v26 }
 0x16f   :  { %1264 = vmatprep.subr.bf16.mxu0 %v1599_v27  ;;  %1296 = vmatprep.subr.bf16.mxu1 %v1602_v31 }
 0x172   :  { %1266 = vmatpush1.bf16.msra.mxu0 %v1607_v37  ;;  %1298 = vmatpush1.bf16.msra.mxu1 %v1611_v39 }
 0x173   :  { %1268 = vmatprep.subr.bf16.mxu0 %v1613_v40  ;;  %1300 = vmatprep.subr.bf16.mxu1 %v1616_v45 }
 0x176   :  { %1270 = vmatpush1.bf16.msra.mxu0 %v1621_v54  ;;  %1302 = vmatpush1.bf16.msra.mxu1 %v1625_v56 }
 0x177   :  { %1272 = vmatprep.subr.bf16.mxu0 %v1627_v57  ;;  %1304 = vmatprep.subr.bf16.mxu1 %v1630_v62 }
 0x17a   :  { %1274 = vmatpush1.bf16.msra.mxu0 %v1633_v8  ;;  %1306 = vmatpush1.bf16.msra.mxu1 %v1637_v9 }
 0x17b   :  { %1276 = vmatprep.subr.bf16.mxu0 %v1639_v10  ;;  %1308 = vmatprep.subr.bf16.mxu1 %v1642_v16 }
 0x17e   :  { %1278 = vmatpush1.bf16.msra.mxu0 %v1645_v20  ;;  %1310 = vmatpush1.bf16.msra.mxu1 %v1649_v21 }
 0x17f   :  { %1312 = vmatprep.subr.bf16.mxu0 %v1550_v38  ;;  %1344 = vmatprep.subr.bf16.mxu1 %v1552_v42 }
 0x234   :  { %v618_v28 = vpop.f32.mrb[2].mxu0  ;;  %v689_v29 = vpop.f32.mrb[2].mxu1 }
 0x235   :  { %v1377_v30 = vadd.f32 %v618_v28, %v1692_v32  ;;  %v620_v35 = vpop.f32.mrb[3].mxu0  ;;  %v691_v36 = vpop.f32.mrb[3].mxu1  ;;  %v1385_v44 = vadd.f32 %v689_v29, %v1701_v52 }
 0x236   :  { %v1378_v41 = vadd.f32 %v620_v35, %v1694_v33  ;;  %v1386_v43 = vadd.f32 %v691_v36, %v1696_v34 }
 0x237   :  { %1424 = vtanh.f32 %v1377_v30 }
 0x238   :  { %1426 = vtanh.f32 %v1378_v41  ;;  %v1041_v41 = vld [vmem:[#allocation4 + $0x401] ss:$0 sm:$0xff] }
 0x239   :  { %1428 = vtanh.f32 %v1386_v43 }
 0x23a   :  { %1430 = vtanh.f32 %v1385_v44 }
 0x241   :  { %v1425_v46 = vpop.eup %1424 }
 0x242   :  { %v702_v47 = vmul.f32 0.5, %v1425_v46  ;;  %v1427_v38 = vpop.eup %1426 }
 0x243   :  { %v703_v42 = vmul.f32 0.5, %v1427_v38  ;;  %v1429_v53 = vpop.eup %1428 }
 0x244   :  { %v706_v48 = vadd.f32 0.5, %v702_v47  ;;  %v1431_v3 = vpop.eup %1430 }
 0x245   :  { %v707_v58 = vadd.f32 0.5, %v703_v42  ;;  %v704_v4 = vmul.f32 0.5, %v1431_v3 }
 0x246   :  { %v711_v59 = vmul.f32 %v1429_v53, %v706_v48 }
 0x247   :  { %v710_v60 = vmul.f32 %v707_v58, %v1704_v15  ;;  %v708_v6 = vadd.f32 0.5, %v704_v4 }
 0x249   :  { %v712_v2 = vadd.f32 %v711_v59, %v710_v60 }
 0x24b   :  { %1432 = vtanh.f32 %v712_v2 }
 0x255   :  { %v1433_v7 = vpop.eup %1432 }
 0x256   :  { %v714_v12 = vmul.f32 %v1433_v7, %v708_v6 }
 0x258   :  { %780 = vmatmul.mubr.f32.vlgmr.msra.gmra.mrb[4].mxu0 %v714_v12  ;;  %851 = vmatmul.mubr.f32.vlgmr.msra.gmra.mrb[4].mxu1 %v714_v12 }
 0x259   :  { %1314 = vmatpush1.bf16.msra.mxu0 %v1554_v49  ;;  %1346 = vmatpush1.bf16.msra.mxu1 %v1557_v50 }
 0x25a   :  { %1316 = vmatprep.subr.bf16.mxu0 %v1559_v51  ;;  %1348 = vmatprep.subr.bf16.mxu1 %v1562_v55 }
 0x25b   :  { %942 = vmatprep.mubr.f32.mxu0 %v1508_v0  ;;  %1013 = vmatprep.mubr.f32.mxu1 %v1508_v0 }
 0x25d   :  { %1318 = vmatpush1.bf16.msra.mxu0 %v1565_v61  ;;  %1350 = vmatpush1.bf16.msra.mxu1 %v1569_v63 }
 0x25e   :  { %1320 = vmatprep.subr.bf16.mxu0 %v1571_v1  ;;  %1352 = vmatprep.subr.bf16.mxu1 %v1574_v5 }
 0x261   :  { %1322 = vmatpush1.bf16.msra.mxu0 %v1579_v11  ;;  %1354 = vmatpush1.bf16.msra.mxu1 %v1583_v13 }
 0x262   :  { %1324 = vmatprep.subr.bf16.mxu0 %v1585_v14  ;;  %1356 = vmatprep.subr.bf16.mxu1 %v1588_v18 }
 0x265   :  { %1326 = vmatpush1.bf16.msra.mxu0 %v1593_v24  ;;  %1358 = vmatpush1.bf16.msra.mxu1 %v1597_v26 }
 0x266   :  { %1328 = vmatprep.subr.bf16.mxu0 %v1599_v27  ;;  %1360 = vmatprep.subr.bf16.mxu1 %v1602_v31 }
 0x269   :  { %1330 = vmatpush1.bf16.msra.mxu0 %v1607_v37  ;;  %1362 = vmatpush1.bf16.msra.mxu1 %v1611_v39 }
 0x26a   :  { %1332 = vmatprep.subr.bf16.mxu0 %v1613_v40  ;;  %1364 = vmatprep.subr.bf16.mxu1 %v1616_v45 }
 0x26d   :  { %1334 = vmatpush1.bf16.msra.mxu0 %v1621_v54  ;;  %1366 = vmatpush1.bf16.msra.mxu1 %v1625_v56 }
 0x26e   :  { %1336 = vmatprep.subr.bf16.mxu0 %v1627_v57  ;;  %1368 = vmatprep.subr.bf16.mxu1 %v1630_v62 }
 0x271   :  { %1338 = vmatpush1.bf16.msra.mxu0 %v1633_v8  ;;  %1370 = vmatpush1.bf16.msra.mxu1 %v1637_v9 }
 0x272   :  { %1340 = vmatprep.subr.bf16.mxu0 %v1639_v10  ;;  %1372 = vmatprep.subr.bf16.mxu1 %v1642_v16 }
 0x275   :  { %1342 = vmatpush1.bf16.msra.mxu0 %v1645_v20  ;;  %1374 = vmatpush1.bf16.msra.mxu1 %v1649_v21 }
 0x32b   :  { %v781_v0 = vpop.f32.mrb[4].mxu0  ;;  %v852_v49 = vpop.f32.mrb[4].mxu1 }
 0x32c   :  { %v1379_v50 = vadd.f32 %v781_v0, %v1692_v32  ;;  %v783_v51 = vpop.f32.mrb[5].mxu0  ;;  %v854_v55 = vpop.f32.mrb[5].mxu1  ;;  %v1387_v1 = vadd.f32 %v852_v49, %v1701_v52 }
 0x32d   :  { %v1380_v61 = vadd.f32 %v783_v51, %v1694_v33  ;;  %v1388_v63 = vadd.f32 %v854_v55, %v1696_v34 }
 0x32e   :  { %1434 = vtanh.f32 %v1379_v50 }
 0x32f   :  { %1436 = vtanh.f32 %v1380_v61 }
 0x330   :  { %1438 = vtanh.f32 %v1388_v63 }
 0x331   :  { %1440 = vtanh.f32 %v1387_v1 }
 0x338   :  { %v1435_v5 = vpop.eup %1434 }
 0x339   :  { %v865_v11 = vmul.f32 0.5, %v1435_v5  ;;  %v1437_v13 = vpop.eup %1436 }
 0x33a   :  { %v866_v18 = vmul.f32 0.5, %v1437_v13  ;;  %v1439_v24 = vpop.eup %1438 }
 0x33b   :  { %v869_v14 = vadd.f32 0.5, %v865_v11  ;;  %v1441_v39 = vpop.eup %1440 }
 0x33c   :  { %v870_v26 = vadd.f32 0.5, %v866_v18  ;;  %v867_v40 = vmul.f32 0.5, %v1441_v39 }
 0x33d   :  { %v874_v27 = vmul.f32 %v1439_v24, %v869_v14 }
 0x33e   :  { %v873_v31 = vmul.f32 %v870_v26, %v712_v2  ;;  %v871_v45 = vadd.f32 0.5, %v867_v40 }
 0x340   :  { %v875_v37 = vadd.f32 %v874_v27, %v873_v31 }
 0x342   :  { %1442 = vtanh.f32 %v875_v37 }
 0x34c   :  { %v1443_v54 = vpop.eup %1442 }
 0x34d   :  { %v877_v56 = vmul.f32 %v1443_v54, %v871_v45 }
 0x34f   :  { %943 = vmatmul.mubr.f32.vlgmr.msra.gmra.mrb[6].mxu0 %v877_v56  ;;  %1014 = vmatmul.mubr.f32.vlgmr.msra.gmra.mrb[6].mxu1 %v877_v56 }
 0x422   :  { %v944_v57 = vpop.f32.mrb[6].mxu0  ;;  %v1015_v62 = vpop.f32.mrb[6].mxu1 }
 0x423   :  { %v1381_v8 = vadd.f32 %v944_v57, %v1692_v32  ;;  %v946_v9 = vpop.f32.mrb[7].mxu0  ;;  %v1017_v10 = vpop.f32.mrb[7].mxu1  ;;  %v1389_v21 = vadd.f32 %v1015_v62, %v1701_v52  ;;  %v1042_v52 = vld [vmem:[#allocation4 + $0x409] ss:$0 sm:$0xff] }
 0x424   :  { %v1382_v16 = vadd.f32 %v946_v9, %v1694_v33  ;;  %v1390_v20 = vadd.f32 %v1017_v10, %v1696_v34 }
 0x425   :  { %1444 = vtanh.f32 %v1381_v8 }
 0x426   :  { %1446 = vtanh.f32 %v1382_v16 }
 0x427   :  { %1448 = vtanh.f32 %v1390_v20 }
 0x428   :  { %1450 = vtanh.f32 %v1389_v21 }
 0x42f   :  { %v1445_v15 = vpop.eup %1444 }
 0x430   :  { %v1028_v17 = vmul.f32 0.5, %v1445_v15  ;;  %v1447_v19 = vpop.eup %1446 }
 0x431   :  { %v1029_v23 = vmul.f32 0.5, %v1447_v19  ;;  %v1449_v25 = vpop.eup %1448 }
 0x432   :  { %v1032_v22 = vadd.f32 0.5, %v1028_v17  ;;  %v1451_v33 = vpop.eup %1450 }
 0x433   :  { %v1033_v28 = vadd.f32 0.5, %v1029_v23  ;;  %v1030_v35 = vmul.f32 0.5, %v1451_v33 }
 0x434   :  { %v1037_v32 = vmul.f32 %v1449_v25, %v1032_v22 }
 0x435   :  { %v1036_v29 = vmul.f32 %v1033_v28, %v875_v37  ;;  %v1034_v36 = vadd.f32 0.5, %v1030_v35 }
 0x437   :  { %v1038_v30 = vadd.f32 %v1037_v32, %v1036_v29 }
 0x439   :  { %1452 = vtanh.f32 %v1038_v30 }
 0x443   :  { %v1453_v34 = vpop.eup %1452 }
 0x444   :  { %v1040_v43 = vmul.f32 %v1453_v34, %v1034_v36 }
 0x446   :  { %v1043_v44 = vmul.f32 %v1041_v41, %v1040_v43 }
 0x448   :  { %1044 = vadd.xlane.f32.xlu0 %v1043_v44 }
 0x4d5   :  { %v1045_v46 = vpop.xlane.xlu0 %1044 }
 0x4d6   :  { %v1046_v47 = vadd.f32 %v1045_v46, %v1042_v52 }
 0x4d8   :  { %1048 = vst.msk [vmem:[%s1791_s2] sm:$0xff] %vm1047_vm0, %v1046_v47 }
 0x4d9   :  { %1053 = vsyncpa [#allocation3], 1 }
 0x4da   :  { %1054 = vsyncpa [#allocation5], 1 }

</bundles_post_ra>
